<compile_context>
chip_gen: v7x
topology: tpu7x:2x2x1
jax: 0.10.0
libtpu: 0.0.40
codegen_flags: <defaults>
</compile_context>

<pallas_src>
import math
import jax
import jax.numpy as jnp
from jax.experimental import pallas as pl
from jax.experimental.pallas import tpu as pltpu


def fourier_features_kernel(x_ref, b_ref, o_ref):
    d = b_ref.shape[1]
    # proj[r, c] = x[r,0]*B[0,c] + x[r,1]*B[1,c]  — two rank-1 MACs on the VPU.
    proj = (
        x_ref[:, 0:1] * b_ref[0:1, :]
        + x_ref[:, 1:2] * b_ref[1:2, :]
    )  # (TB, d) float32
    cos_p = jnp.cos(proj)
    sin_p = jnp.sin(proj)
    if d % 128 == 0:
        # Each half-write is already full-lane-width -> unmasked vst; keep the
        # no-concat form.
        o_ref[:, :d] = cos_p.astype(o_ref.dtype)
        o_ref[:, d:] = sin_p.astype(o_ref.dtype)
    else:
        # Assemble the full-width row once so the store is lane-dense instead
        # of two masked half-vreg partial stores.
        o_ref[...] = jnp.concatenate([cos_p, sin_p], axis=1).astype(o_ref.dtype)


def _choose_tile_batch(batch, d, out_bytes, vmem_buffer_budget_bytes):
    """Pick a batch tile from the VMEM budget (double-buffered in + out)."""
    # (tb, 2) f32 x block pads to 128 lanes in VMEM -> 512 B/row per buffer.
    x_row_bytes = 128 * 4
    out_row_bytes = 2 * d * out_bytes
    per_row = 2 * (x_row_bytes + out_row_bytes)          # x2 for double buffering
    tb = max(8, (vmem_buffer_budget_bytes // per_row) // 8 * 8)
    if batch >= 4096:
        # Keep >= 4 grid steps: pipeline overlap + v7x megacore sharding of the
        # "parallel" axis.
        tb = min(tb, max(1024, (batch // 4) // 8 * 8))
    if tb >= batch:
        tb = batch          # single tile; block dim == full array dim is legal
    return tb


def fourier_features(x, b_mat, *, out_dtype=jnp.float32,
                     vmem_buffer_budget_bytes=24 * 1024 * 1024):
    """x: (batch, 2) float32; b_mat: (2, d) float32 -> (batch, 2*d) out_dtype."""
    batch, two = x.shape
    assert two == 2
    d = b_mat.shape[1]
    out_bytes = jnp.dtype(out_dtype).itemsize

    tb = _choose_tile_batch(batch, d, out_bytes, vmem_buffer_budget_bytes)
    grid = (pl.cdiv(batch, tb),)
    # Note: when batch % tb != 0, the last partial tile computes cos/sin on
    # Pallas-padded rows; the writes are masked so results stay correct.

    cost = pl.CostEstimate(
        flops=3 * batch * d,                              # 2 mul + 1 add per proj elem
        transcendentals=2 * batch * d,                    # one cos + one sin per elem
        bytes_accessed=4 * batch * 2 + 4 * 2 * d + out_bytes * batch * 2 * d,
    )

    return pl.pallas_call(
        fourier_features_kernel,
        out_shape=jax.ShapeDtypeStruct((batch, 2 * d), out_dtype),
        grid=grid,
        in_specs=[
            pl.BlockSpec((tb, 2), lambda i: (i, 0)),      # streamed batch tile of x
            pl.BlockSpec((2, d), lambda i: (0, 0)),       # B stays VMEM-resident
        ],
        out_specs=pl.BlockSpec((tb, 2 * d), lambda i: (i, 0)),
        compiler_params=pltpu.CompilerParams(
            dimension_semantics=("parallel",),            # megacore on v7x
            vmem_limit_bytes=40 * 1024 * 1024,            # < v7x 64 MiB physical
        ),
        cost_estimate=cost,
    )(x, b_mat)


if __name__ == "__main__":
    # Deterministic parameter init mirroring the module's __init__.
    fourier_embedding_dim = 128    # multiple of 128 -> lane-dense split stores
    fourier_embedding_scale = 1.0

    key = jax.random.PRNGKey(0)
    k_b, k_x = jax.random.split(key)

    B_mat = (
        2.0 * math.pi * fourier_embedding_scale
        * jax.random.normal(k_b, (2, fourier_embedding_dim), dtype=jnp.float32)
    )

    batch = 64
    x = jax.random.normal(k_x, (batch, 2), dtype=jnp.float32)

    # Reference in plain JAX.
    proj = x @ B_mat
    ref = jnp.concatenate([jnp.cos(proj), jnp.sin(proj)], axis=1)

    # f32 output (matches the PyTorch module exactly).
    out_f32 = fourier_features(x, B_mat)
    jax.block_until_ready(out_f32)
    assert out_f32.shape == (batch, 2 * fourier_embedding_dim)
    assert out_f32.dtype == jnp.float32
    assert jnp.allclose(out_f32, ref, atol=1e-5, rtol=1e-5)

    # bf16 output path (writeback-bandwidth optimization); looser tolerance.
    out_bf16 = fourier_features(x, B_mat, out_dtype=jnp.bfloat16)
    jax.block_until_ready(out_bf16)
    assert out_bf16.dtype == jnp.bfloat16
    assert jnp.allclose(out_bf16.astype(jnp.float32), ref, atol=2e-2, rtol=2e-2)

    print("KERNEL_OK")
</pallas_src>

<mosaic_0001>
module attributes {stable_mosaic.version = 11 : i64} {
  func.func @fourier_features_kernel(%arg0: i32, %arg1: memref<64x2xf32, #tpu.memory_space<vmem>>, %arg2: memref<2x128xf32, #tpu.memory_space<vmem>>, %arg3: memref<64x256xf32, #tpu.memory_space<vmem>>) attributes {dimension_semantics = [#tpu.dimension_semantics<parallel>], iteration_bounds = array<i64: 1>, scalar_prefetch = 0 : i64, scratch_operands = 0 : i64, tpu.core_type = #tpu.core_type<tc>, window_params = [{transform_indices = @transform_0, window_bounds = array<i64: 64, 2>}, {pipeline_mode = #tpu.pipeline_mode<synchronous>, transform_indices = @transform_1, window_bounds = array<i64: 2, 128>}, {transform_indices = @transform_2, window_bounds = array<i64: 64, 256>}]} {
    %c0 = arith.constant 0 : index
    %c0_0 = arith.constant 0 : index
    %0 = vector.load %arg1[%c0, %c0_0] : memref<64x2xf32, #tpu.memory_space<vmem>>, vector<64x1xf32>
    %c0_1 = arith.constant 0 : index
    %c0_2 = arith.constant 0 : index
    %1 = vector.load %arg2[%c0_1, %c0_2] : memref<2x128xf32, #tpu.memory_space<vmem>>, vector<1x128xf32>
    %2 = vector.broadcast %0 : vector<64x1xf32> to vector<64x128xf32>
    %3 = vector.broadcast %1 : vector<1x128xf32> to vector<64x128xf32>
    %4 = arith.mulf %2, %3 : vector<64x128xf32>
    %c0_3 = arith.constant 0 : index
    %c1 = arith.constant 1 : index
    %5 = vector.load %arg1[%c0_3, %c1] : memref<64x2xf32, #tpu.memory_space<vmem>>, vector<64x1xf32>
    %c1_4 = arith.constant 1 : index
    %c0_5 = arith.constant 0 : index
    %6 = vector.load %arg2[%c1_4, %c0_5] : memref<2x128xf32, #tpu.memory_space<vmem>>, vector<1x128xf32>
    %7 = vector.broadcast %5 : vector<64x1xf32> to vector<64x128xf32>
    %8 = vector.broadcast %6 : vector<1x128xf32> to vector<64x128xf32>
    %9 = arith.mulf %7, %8 : vector<64x128xf32>
    %10 = arith.addf %4, %9 : vector<64x128xf32>
    %11 = math.cos %10 : vector<64x128xf32>
    %12 = math.sin %10 : vector<64x128xf32>
    %c0_6 = arith.constant 0 : index
    %c0_7 = arith.constant 0 : index
    %13 = vector.load %arg3[%c0_6, %c0_7] : memref<64x256xf32, #tpu.memory_space<vmem>>, vector<64x128xf32>
    tpu.vector_store %arg3[%c0_6, %c0_7], %11 {strides = array<i32>} : memref<64x256xf32, #tpu.memory_space<vmem>>, vector<64x128xf32>,
    %c0_8 = arith.constant 0 : index
    %c128 = arith.constant 128 : index
    %14 = vector.load %arg3[%c0_8, %c128] : memref<64x256xf32, #tpu.memory_space<vmem>>, vector<64x128xf32>
    tpu.vector_store %arg3[%c0_8, %c128], %12 {strides = array<i32>} : memref<64x256xf32, #tpu.memory_space<vmem>>, vector<64x128xf32>,
    return
  }
  func.func @transform_0(%arg0: i32) -> (i32, i32) {
    %c0_i32 = arith.constant 0 : i32
    %c0_i32_0 = arith.constant 0 : i32
    return %arg0, %c0_i32 : i32, i32
  }
  func.func @transform_1(%arg0: i32) -> (i32, i32) {
    %c0_i32 = arith.constant 0 : i32
    %c0_i32_0 = arith.constant 0 : i32
    %c0_i32_1 = arith.constant 0 : i32
    return %c0_i32, %c0_i32_0 : i32, i32
  }
  func.func @transform_2(%arg0: i32) -> (i32, i32) {
    %c0_i32 = arith.constant 0 : i32
    %c0_i32_0 = arith.constant 0 : i32
    return %arg0, %c0_i32 : i32, i32
  }
}

</mosaic_0001>

<bundles_post_ra>
// kernel: tpu_custom_call.1
= control target key start
LH: loop header
LB: loop body
LE: loop exit
PB: predicated region body
PF: predicated region fallthrough
CT: control target
= control target key end

     0   :  { %v1984_v2 = vmov 0   ;;  %s2817_s0 = inlined_call_operand.vmem [shape: f32[64,2], index: 0, kind: input, shape index: {}]   ;;  %s2818_s1 = inlined_call_operand.vmem [shape: f32[2,128], index: 1, kind: input, shape index: {}]   ;;  %s2819_s2 = inlined_call_operand.hbm [shape: f32[64,256], index: 2, kind: output, shape index: {}]  }
   0x1   :  { %v14_v0 = vld [vmem:[%s2817_s0 + $0x10] sm:$0xff]  ;;  %v12_v1 = vld [vmem:[%s2817_s0] sm:$0xff]  ;;  %1924 = vset.pattern.permute.xlu1 %v1984_v2  ;;  %1923 = vset.pattern.permute.xlu0 %v1984_v2  ;;  %v15_v3 = vld [vmem:[%s2817_s0 + $0x18] sm:$0xff] }
   0x2   :  { %33 = vperm.xlu1 %1924, %v14_v0   ;;  %23 = vperm.xlu0 %1923, %v12_v1   ;;  %v13_v4 = vld [vmem:[%s2817_s0 + $0x8] sm:$0xff] }
   0x3   :  { %7 = vsyncpa [#allocation3], 0  ;;  %v17_v5 = vld [vmem:[%s2817_s0 + $0x28] sm:$0xff]  ;;  %v16_v6 = vld [vmem:[%s2817_s0 + $0x20] sm:$0xff]  ;;  %v1985_v9 = vmov 1  }
   0x4   :  { %v19_v7 = vld [vmem:[%s2817_s0 + $0x38] sm:$0xff]  ;;  %v18_v8 = vld [vmem:[%s2817_s0 + $0x30] sm:$0xff]  ;;  %v1814_v12 = vld [vmem:[%s2818_s1] ss:$0 sm:$0xff]  ;;  %v1986_v62 = vmov 683565275  }
   0x5   :  { %v2050_v24 = vld [vmem:[%s2818_s1 + $0x1] ss:$0 sm:$0xff]  ;;  %v1987_v2 = vmov 2475754826  }
   0x6   :  { %38 = vperm.xlu1 %1924, %v15_v3   ;;  %28 = vperm.xlu0 %1923, %v13_v4  }
   0xa   :  { %48 = vperm.xlu1 %1924, %v17_v5   ;;  %43 = vperm.xlu0 %1923, %v16_v6  }
   0xe   :  { %58 = vperm.xlu1 %1924, %v19_v7   ;;  %53 = vperm.xlu0 %1923, %v18_v8  }
  0x12   :  { %1926 = vset.pattern.permute.xlu1 %v1985_v9  ;;  %1925 = vset.pattern.permute.xlu0 %v1985_v9 }
  0x13   :  { %79 = vperm.xlu1 %1926, %v13_v4   ;;  %75 = vperm.xlu0 %1925, %v12_v1   ;;  %v1988_v4 = vmov 2131351028  }
  0x17   :  { %83 = vperm.xlu1 %1926, %v14_v0   ;;  %87 = vperm.xlu0 %1925, %v15_v3  }
  0x1b   :  { %91 = vperm.xlu1 %1926, %v16_v6   ;;  %95 = vperm.xlu0 %1925, %v17_v5   ;;  %v1989_v6 = vmov 2102212464  }
  0x1f   :  { %99 = vperm.xlu1 %1926, %v18_v8   ;;  %103 = vperm.xlu0 %1925, %v19_v7   ;;  %v1990_v8 = vmov 920167782  }
  0x81   :  { %v34_v10 = vpop.permute.xlu1 %33  ;;  %v24_v11 = vpop.permute.xlu0 %23 }
  0x82   :  { %v65_v27 = vmul.f32 %v1814_v12, %v24_v11  ;;  %v67_v38 = vmul.f32 %v1814_v12, %v34_v10 }
  0x85   :  { %v39_v13 = vpop.permute.xlu1 %38  ;;  %v29_v14 = vpop.permute.xlu0 %28 }
  0x86   :  { %v2037_v15 = vmul.f32 %v1814_v12, %v39_v13  ;;  %v66_v28 = vmul.f32 %v1814_v12, %v29_v14 }
  0x89   :  { %v49_v16 = vpop.permute.xlu1 %48  ;;  %v44_v17 = vpop.permute.xlu0 %43 }
  0x8a   :  { %v2039_v18 = vmul.f32 %v1814_v12, %v49_v16  ;;  %v2041_v19 = vmul.f32 %v1814_v12, %v44_v17  ;;  %v1991_v16 = vmov 1326507024  }
  0x8d   :  { %v59_v20 = vpop.permute.xlu1 %58  ;;  %v54_v21 = vpop.permute.xlu0 %53 }
  0x8e   :  { %v2043_v22 = vmul.f32 %v1814_v12, %v59_v20  ;;  %v2045_v23 = vmul.f32 %v1814_v12, %v54_v21 }
  0x92   :  { %v80_v25 = vpop.permute.xlu1 %79  ;;  %v76_v26 = vpop.permute.xlu0 %75 }
  0x93   :  { %v111_v29 = vmul.f32 %v2050_v24, %v80_v25  ;;  %v110_v30 = vmul.f32 %v2050_v24, %v76_v26 }
  0x95   :  { %v2054_v31 = vadd.f32 %v111_v29, %v66_v28  ;;  %v2056_v32 = vadd.f32 %v110_v30, %v65_v27 }
  0x96   :  { %v84_v33 = vpop.permute.xlu1 %83 }
  0x97   :  { %v229_v34 = vand.u32 2147483647, %v2054_v31  ;;  %v232_v35 = vand.u32 2139095040, %v2054_v31  ;;  %v126_v36 = vand.u32 2147483647, %v2056_v32  ;;  %v129_v37 = vand.u32 2139095040, %v2056_v32 }
  0x98   :  { %v112_v40 = vmul.f32 %v2050_v24, %v84_v33  ;;  %vm231_vm13 = vcmp.lt.s32.totalorder %v2054_v31, 0 }
  0x99   :  { %v233_v39 = vshrl.u32 %v232_v35, 23  ;;  %v236_v41 = vand.u32 8388607, %v229_v34  ;;  %v130_v42 = vshrl.u32 %v129_v37, 23  ;;  %v133_v43 = vand.u32 8388607, %v126_v36 }
  0x9a   :  { %v2067_v45 = vadd.f32 %v112_v40, %v67_v38  ;;  %vm2154_vm14 = vcmp.le.f32.partialorder %v229_v34, 0.7853982 }
  0x9b   :  { %v1820_v44 = vadd.s32 4294967169, %v233_v39  ;;  %v1816_v46 = vadd.s32 4294967169, %v130_v42  ;;  %v237_v48 = vor.u32 8388608, %v236_v41  ;;  %v134_v49 = vor.u32 8388608, %v133_v43 }
  0x9c   :  { %v335_v51 = vand.u32 2139095040, %v2067_v45  ;;  %v332_v60 = vand.u32 2147483647, %v2067_v45 }
  0x9d   :  { %v239_v47 = vadd.s32 1, %v1820_v44  ;;  %v136_v50 = vadd.s32 1, %v1816_v46  ;;  %v2070_v57 = vshll.u32 %v237_v48, 8  ;;  %v2074_v59 = vshll.u32 %v134_v49, 8 }
  0x9e   :  { %v336_v53 = vshrl.u32 %v335_v51, 23 }
  0x9f   :  { %vm240_vm0 = vcmp.gt.s32.totalorder %v239_v47, 0  ;;  %vm137_vm1 = vcmp.gt.s32.totalorder %v136_v50, 0 }
  0xa0   :  { %v241_v52 = vsel %vm240_vm0, %v239_v47, 0  ;;  %v138_v56 = vsel %vm137_vm1, %v136_v50, 0  ;;  %v2078_v1 = vadd.s32 4294967169, %v336_v53  ;;  %vm128_vm0 = vcmp.lt.s32.totalorder %v2056_v32, 0 }
  0xa1   :  { %v242_v54 = vshrl.u32 %v241_v52, 5  ;;  %v243_v55 = vand.u32 31, %v241_v52  ;;  %v2072_v58 = vshrl.u32 %v138_v56, 5  ;;  %v140_v0 = vand.u32 31, %v138_v56 }
  0xa3   :  { %v244_v61 = vsub.s32 32, %v243_v55  ;;  %v246_v63 = vshll.u32 %v1986_v62, %v243_v55  ;;  %v249_v3 = vshll.u32 %v1987_v2, %v243_v55  ;;  %v252_v5 = vshll.u32 %v1988_v4, %v243_v55 }
  0xa4   :  { %v255_v7 = vshll.u32 %v1989_v6, %v243_v55  ;;  %v258_v9 = vshll.u32 %v1990_v8, %v243_v55  ;;  %vm261_vm2 = vcmp.lt.s32.totalorder %v242_v54, 1  ;;  %vm262_vm3 = vcmp.lt.s32.totalorder %v242_v54, 2 }
  0xa5   :  { %v247_v10 = vshrl.u32 %v1987_v2, %v244_v61  ;;  %v250_v11 = vshrl.u32 %v1988_v4, %v244_v61  ;;  %v253_v12 = vshrl.u32 %v1989_v6, %v244_v61  ;;  %v245_v13 = vshrl.u32 %v1986_v62, %v244_v61 }
  0xa6   :  { %v256_v14 = vshrl.u32 %v1990_v8, %v244_v61  ;;  %v259_v17 = vshrl.u32 %v1991_v16, %v244_v61  ;;  %v141_v26 = vsub.s32 32, %v140_v0  ;;  %vm263_vm4 = vcmp.lt.s32.totalorder %v242_v54, 3 }
  0xa7   :  { %v248_v20 = vor.u32 %v247_v10, %v246_v63  ;;  %v251_v21 = vor.u32 %v250_v11, %v249_v3  ;;  %v254_v25 = vor.u32 %v253_v12, %v252_v5  ;;  %vm264_vm5 = vcmp.lt.s32.totalorder %v242_v54, 4 }
  0xa8   :  { %v257_v27 = vor.u32 %v256_v14, %v255_v7  ;;  %v260_v28 = vor.u32 %v259_v17, %v258_v9  ;;  %v143_v40 = vshll.u32 %v1986_v62, %v140_v0  ;;  %v144_v43 = vshrl.u32 %v1987_v2, %v141_v26 }
  0xa9   :  { %v265_v29 = vsel %vm261_vm2, %v245_v13, %v248_v20  ;;  %v266_v30 = vsel %vm264_vm5, %v254_v25, 2102212464  ;;  %v269_v33 = vsel %vm261_vm2, %v248_v20, %v251_v21  ;;  %v273_v35 = vsel %vm261_vm2, %v251_v21, %v254_v25 }
  0xaa   :  { %v267_v37 = vsel %vm263_vm4, %v251_v21, %v266_v30  ;;  %v270_v38 = vsel %vm264_vm5, %v257_v27, 920167782  ;;  %v274_v39 = vsel %vm264_vm5, %v260_v28, 1326507024  ;;  %v146_v44 = vshll.u32 %v1987_v2, %v140_v0 }
  0xab   :  { %v271_v41 = vsel %vm263_vm4, %v254_v25, %v270_v38  ;;  %v275_v42 = vsel %vm263_vm4, %v257_v27, %v274_v39  ;;  %v268_v46 = vsel %vm262_vm3, %v265_v29, %v267_v37  ;;  %v147_v49 = vshrl.u32 %v1988_v4, %v141_v26  ;;  %v88_v29 = vpop.permute.xlu0 %87 }
  0xac   :  { %v272_v47 = vsel %vm262_vm3, %v269_v33, %v271_v41  ;;  %v276_v48 = vsel %vm262_vm3, %v273_v35, %v275_v42  ;;  %v145_v55 = vor.u32 %v144_v43, %v143_v40  ;;  %v149_v61 = vshll.u32 %v1988_v4, %v140_v0 }
  0xad   :  { %v2101_v50 = vmul.u32.u64.low %v2070_v57, %v276_v48  ;;  %v2102_v51 = vmul.u32.u64.high %v2070_v57, %v276_v48, %v2101_v50  ;;  %v2105_v52 = vmul.u32.u64.low %v2070_v57, %v272_v47  ;;  %v2106_v53 = vmul.u32.u64.high %v2070_v57, %v272_v47, %v2105_v52 }
  0xae   :  { %v148_v56 = vor.u32 %v147_v49, %v146_v44  ;;  %v150_v63 = vshrl.u32 %v1989_v6, %v141_v26  ;;  %v142_v54 = vshrl.u32 %v1986_v62, %v141_v26  ;;  %v152_v3 = vshll.u32 %v1989_v6, %v140_v0 }
  0xaf   :  { %v153_v5 = vshrl.u32 %v1990_v8, %v141_v26  ;;  %v156_v7 = vshrl.u32 %v1991_v16, %v141_v26  ;;  %v284_v9 = vmul.u32 %v2070_v57, %v268_v46  ;;  %v155_v11 = vshll.u32 %v1990_v8, %v140_v0 }
  0xb0   :  { %v151_v10 = vor.u32 %v150_v63, %v149_v61  ;;  %vm158_vm6 = vcmp.lt.s32.totalorder %v2072_v58, 1  ;;  %vm286_vm7 = vc.u32 %v2102_v51, %v2105_v52  ;;  %v287_v12 = vadd.s32 1, %v2106_v53 }
  0xb1   :  { %v154_v13 = vor.u32 %v153_v5, %v152_v3  ;;  %vm159_vm8 = vcmp.lt.s32.totalorder %v2072_v58, 2  ;;  %v157_v14 = vor.u32 %v156_v7, %v155_v11  ;;  %vm160_vm9 = vcmp.lt.s32.totalorder %v2072_v58, 3  ;;  %v92_v7 = vpop.permute.xlu1 %91 }
  0xb2   :  { %vm161_vm10 = vcmp.lt.s32.totalorder %v2072_v58, 4  ;;  %v166_v17 = vsel %vm158_vm6, %v145_v55, %v148_v56  ;;  %v288_v57 = vsel %vm286_vm7, %v287_v12, %v2106_v53  ;;  %v170_v21 = vsel %vm158_vm6, %v148_v56, %v151_v10 }
  0xb3   :  { %v163_v20 = vsel %vm161_vm10, %v151_v10, 2102212464  ;;  %v167_v0 = vsel %vm161_vm10, %v154_v13, 920167782  ;;  %v289_v25 = vadd.s32 %v288_v57, %v284_v9  ;;  %v162_v26 = vsel %vm158_vm6, %v142_v54, %v145_v55 }
  0xb4   :  { %v168_v27 = vsel %vm160_vm9, %v151_v10, %v167_v0  ;;  %v171_v28 = vsel %vm161_vm10, %v157_v14, 1326507024  ;;  %v164_v30 = vsel %vm160_vm9, %v148_v56, %v163_v20  ;;  %v342_v37 = vadd.s32 1, %v2078_v1 }
  0xb5   :  { %v169_v33 = vsel %vm159_vm8, %v166_v17, %v168_v27  ;;  %v172_v35 = vsel %vm160_vm9, %v154_v13, %v171_v28  ;;  %v290_v38 = vadd.s32 536870912, %v289_v25  ;;  %v113_v44 = vmul.f32 %v2050_v24, %v88_v29 }
  0xb6   :  { %v173_v39 = vsel %vm159_vm8, %v170_v21, %v172_v35  ;;  %v2131_v40 = vmul.u32.u64.low %v2074_v59, %v169_v33  ;;  %v2132_v41 = vmul.u32.u64.high %v2074_v59, %v169_v33, %v2131_v40  ;;  %vm343_vm11 = vcmp.gt.s32.totalorder %v342_v37, 0 }
  0xb7   :  { %v2135_v42 = vmul.u32.u64.low %v2074_v59, %v173_v39  ;;  %v2136_v43 = vmul.u32.u64.high %v2074_v59, %v173_v39, %v2135_v42  ;;  %v291_v46 = vshrl.u32 %v290_v38, 30  ;;  %v165_v47 = vsel %vm159_vm8, %v162_v26, %v164_v30 }
  0xb8   :  { %v344_v1 = vsel %vm343_vm11, %v342_v37, 0  ;;  %v184_v49 = vadd.s32 1, %v2132_v41  ;;  %v339_v50 = vand.u32 8388607, %v332_v60  ;;  %v181_v55 = vmul.u32 %v2074_v59, %v165_v47 }
  0xb9   :  { %v292_v48 = vshll.u32 %v291_v46, 30  ;;  %v346_v53 = vand.u32 31, %v344_v1  ;;  %vm183_vm12 = vc.u32 %v2136_v43, %v2131_v40  ;;  %v2147_v56 = vadd.f32 %v113_v44, %v2037_v15 }
  0xba   :  { %v185_v63 = vsel %vm183_vm12, %v184_v49, %v2132_v41  ;;  %v340_v3 = vor.u32 8388608, %v339_v50  ;;  %v315_v9 = vsub.s32 4, %v291_v46  ;;  %v2162_v14 = vmul.f32 %v2050_v24, %v92_v7 }
  0xbb   :  { %v293_v61 = vsub.s32 %v289_v25, %v292_v48  ;;  %v186_v58 = vadd.s32 %v185_v63, %v181_v55  ;;  %v347_v5 = vsub.s32 32, %v346_v53  ;;  %v438_v11 = vand.u32 2139095040, %v2147_v56 }
  0xbc   :  { %v435_v13 = vand.u32 2147483647, %v2147_v56  ;;  %v285_v17 = vadd.s32 %v2105_v52, %v2102_v51  ;;  %v2167_v0 = vshll.u32 %v340_v3, 8  ;;  %v316_v34 = vsel %vm231_vm13, %v315_v9, %v291_v46 }
  0xbd   :  { %v295_v54 = vsub.s32 0, %v293_v61  ;;  %v187_v10 = vadd.s32 536870912, %v186_v58  ;;  %v350_v20 = vshrl.u32 %v1987_v2, %v347_v5  ;;  %v2172_v25 = vshrl.u32 %v344_v1, 5 }
  0xbe   :  { %v439_v26 = vshrl.u32 %v438_v11, 23  ;;  %v349_v28 = vshll.u32 %v1986_v62, %v346_v53  ;;  %v353_v29 = vshrl.u32 %v1988_v4, %v347_v5  ;;  %v359_v51 = vshrl.u32 %v1990_v8, %v347_v5 }
  0xbf   :  { %v1821_v59 = vmin.u32 %v295_v54, %v293_v61  ;;  %v2158_v12 = vshrl.u32 %v187_v10, 30  ;;  %v182_v52 = vadd.s32 %v2131_v40, %v2136_v43  ;;  %v352_v33 = vshll.u32 %v1987_v2, %v346_v53 }
  0xc0   :  { %v356_v35 = vshrl.u32 %v1989_v6, %v347_v5  ;;  %v2184_v37 = vsel %vm2154_vm14, 0, %v316_v34  ;;  %v351_v38 = vor.u32 %v350_v20, %v349_v28  ;;  %v358_v39 = vshll.u32 %v1989_v6, %v346_v53 }
  0xc1   :  { %v297_v57 = vclz %v1821_v59  ;;  %v189_v21 = vshll.u32 %v2158_v12, 30  ;;  %v355_v44 = vshll.u32 %v1988_v4, %v346_v53  ;;  %v362_v40 = vshrl.u32 %v1991_v16, %v347_v5 }
  0xc2   :  { %v354_v47 = vor.u32 %v353_v29, %v352_v33  ;;  %v360_v1 = vor.u32 %v359_v51, %v358_v39  ;;  %v348_v49 = vshrl.u32 %v1986_v62, %v347_v5  ;;  %v361_v55 = vshll.u32 %v1990_v8, %v346_v53 }
  0xc3   :  { %v1822_v27 = vadd.s32 4294967294, %v297_v57  ;;  %v2178_v30 = vsub.s32 %v186_v58, %v189_v21  ;;  %v357_v50 = vor.u32 %v356_v35, %v355_v44  ;;  %v212_v3 = vsub.s32 4, %v2158_v12 }
  0xc4   :  { %v363_v9 = vor.u32 %v362_v40, %v361_v55  ;;  %vm364_vm1 = vcmp.lt.s32.totalorder %v2172_v25, 1  ;;  %vm367_vm2 = vcmp.lt.s32.totalorder %v2172_v25, 4  ;;  %vm365_vm3 = vcmp.lt.s32.totalorder %v2172_v25, 2 }
  0xc5   :  { %vm1823_vm15 = vcmp.lt.s32.totalorder %v1822_v27, 0  ;;  %v192_v42 = vsub.s32 0, %v2178_v30  ;;  %v372_v59 = vsel %vm364_vm1, %v351_v38, %v354_v47  ;;  %v373_v5 = vsel %vm367_vm2, %v360_v1, 920167782 }
  0xc6   :  { %v300_v41 = vsel %vm1823_vm15, 0, %v1822_v27  ;;  %vm366_vm4 = vcmp.lt.s32.totalorder %v2172_v25, 3  ;;  %vm2203_vm5 = vcmp.le.f32.partialorder %v126_v36, 0.7853982  ;;  %v369_v20 = vsel %vm367_vm2, %v357_v50, 2102212464 }
  0xc7   :  { %v301_v43 = vsub.s32 32, %v300_v41  ;;  %v305_v46 = vsub.s32 4294967266, %v300_v41  ;;  %v1817_v48 = vmin.u32 %v192_v42, %v2178_v30  ;;  %v302_v63 = vshll.u32 %v293_v61, %v300_v41 }
  0xc8   :  { %v368_v61 = vsel %vm364_vm1, %v348_v49, %v351_v38  ;;  %v374_v34 = vsel %vm366_vm4, %v357_v50, %v373_v5  ;;  %v376_v21 = vsel %vm364_vm1, %v354_v47, %v357_v50  ;;  %v377_v29 = vsel %vm367_vm2, %v363_v9, 1326507024 }
  0xc9   :  { %v303_v58 = vshrl.u32 %v285_v17, %v301_v43  ;;  %v306_v54 = vadd.s32 127, %v305_v46  ;;  %v194_v7 = vclz %v1817_v48  ;;  %v375_v28 = vsel %vm365_vm3, %v372_v59, %v374_v34 }
  0xca   :  { %v378_v33 = vsel %vm366_vm4, %v360_v1, %v377_v29  ;;  %v1828_v35 = vadd.s32 4294967169, %v439_v26  ;;  %v370_v41 = vsel %vm366_vm4, %v354_v47, %v369_v20  ;;  %v1147_v55 = vadd.s32 3, %v2184_v37 }
  0xcb   :  { %v304_v10 = vor.u32 %v303_v58, %v302_v63  ;;  %v307_v11 = vshll.u32 %v306_v54, 23  ;;  %v1818_v53 = vadd.s32 4294967294, %v194_v7  ;;  %v379_v42 = vsel %vm365_vm3, %v376_v21, %v378_v33 }
  0xcc   :  { %v2223_v43 = vmul.u32.u64.low %v2167_v0, %v379_v42  ;;  %v2224_v46 = vmul.u32.u64.high %v2167_v0, %v379_v42, %v2223_v43  ;;  %v2227_v1 = vmul.u32.u64.low %v2167_v0, %v375_v28  ;;  %v2228_v26 = vmul.u32.u64.high %v2167_v0, %v375_v28, %v2227_v1 }
  0xcd   :  { %v308_v17 = vor.u32 4788187, %v307_v11  ;;  %v311_v27 = vcvt.s32.f32 %v304_v10  ;;  %vm1819_vm6 = vcmp.lt.s32.totalorder %v1818_v53, 0  ;;  %v213_v47 = vsel %vm128_vm0, %v212_v3, %v2158_v12 }
  0xce   :  { %v197_v36 = vsel %vm1819_vm6, 0, %v1818_v53  ;;  %v445_v63 = vadd.s32 1, %v1828_v35  ;;  %v371_v54 = vsel %vm365_vm3, %v368_v61, %v370_v41  ;;  %v2241_v9 = vand.u32 3, %v2184_v37 }
  0xcf   :  { %v309_v51 = vand.u32 2147483647, %v308_v17  ;;  %v198_v38 = vsub.s32 32, %v197_v36  ;;  %v202_v39 = vsub.s32 4294967266, %v197_v36  ;;  %v199_v40 = vshll.u32 %v2178_v30, %v197_v36 }
  0xd0   :  { %vm389_vm7 = vc.u32 %v2224_v46, %v2227_v1  ;;  %vm446_vm8 = vcmp.gt.s32.totalorder %v445_v63, 0  ;;  %v215_v25 = vsel %vm2203_vm5, 0, %v213_v47  ;;  %v390_v10 = vadd.s32 1, %v2228_v26 }
  0xd1   :  { %v312_v44 = vmul.f32 %v311_v27, %v309_v51  ;;  %v200_v48 = vshrl.u32 %v182_v52, %v198_v38  ;;  %v203_v49 = vadd.s32 127, %v202_v39  ;;  %v442_v52 = vand.u32 8388607, %v435_v13 }
  0xd2   :  { %v2250_v11 = vand.u32 3, %v1147_v55  ;;  %v387_v59 = vmul.u32 %v2167_v0, %v371_v54  ;;  %v447_v37 = vsel %vm446_vm8, %v445_v63, 0  ;;  %v391_v61 = vsel %vm389_vm7, %v390_v10, %v2228_v26 }
  0xd3   :  { %v313_v50 = vxor.u32 2147483648, %v312_v44  ;;  %v201_v58 = vor.u32 %v200_v48, %v199_v40  ;;  %v204_v30 = vshll.u32 %v203_v49, 23  ;;  %v1043_v17 = vadd.s32 3, %v215_v25 }
  0xd4   :  { %v392_v15 = vadd.s32 %v391_v61, %v387_v59  ;;  %v443_v20 = vor.u32 8388608, %v442_v52  ;;  %v449_v34 = vand.u32 31, %v447_v37  ;;  %v2256_v27 = vadd.f32 %v2162_v14, %v2041_v19 }
  0xd5   :  { %v314_v7 = vsel %vm231_vm13, %v313_v50, %v312_v44  ;;  %v205_v3 = vor.u32 4788187, %v204_v30  ;;  %v208_v53 = vcvt.s32.f32 %v201_v58  ;;  %vm324_vm9 = vcmp.eq.s32.totalorder %v2241_v9, 0 }
  0xd6   :  { %v317_v12 = vsel %vm2154_vm14, %v2054_v31, %v314_v7  ;;  %v393_v28 = vadd.s32 536870912, %v392_v15  ;;  %v450_v29 = vsub.s32 32, %v449_v34  ;;  %vm327_vm10 = vcmp.eq.s32.totalorder %v2241_v9, 2 }
  0xd7   :  { %1927 = vcosq.f32 %v317_v12  ;;  %v206_v5 = vand.u32 2147483647, %v205_v3  ;;  %vm1150_vm11 = vcmp.eq.s32.totalorder %v2250_v11, 0  ;;  %vm1153_vm12 = vcmp.eq.s32.totalorder %v2250_v11, 2 }
  0xd8   :  { %1929 = vsinq.f32 %v317_v12  ;;  %vm323_vm13 = vcmp.lt.s32.totalorder %v2241_v9, 2  ;;  %vm1149_vm14 = vcmp.lt.s32.totalorder %v2250_v11, 2  ;;  %v2264_v51 = vand.u32 3, %v215_v25 }
  0xd9   :  { %v209_v21 = vmul.f32 %v208_v53, %v206_v5  ;;  %v2266_v36 = vand.u32 3, %v1043_v17  ;;  %v2268_v19 = vshrl.u32 %v393_v28, 30  ;;  %v2270_v14 = vshll.u32 %v443_v20, 8 }
  0xda   :  { %vm321_vm15 = vweird.f32 %v2054_v31  ;;  %v2276_v35 = vadd.s32 %v2227_v1, %v2224_v46  ;;  %v2278_v38 = vshrl.u32 %v447_v37, 5  ;;  %v541_v39 = vand.u32 2139095040, %v2256_v27 }
  0xdb   :  { %v210_v0 = vxor.u32 2147483648, %v209_v21  ;;  %v395_v42 = vshll.u32 %v2268_v19, 30  ;;  %v456_v44 = vshrl.u32 %v1988_v4, %v450_v29  ;;  %v459_v40 = vshrl.u32 %v1989_v6, %v450_v29 }
  0xdc   :  { %v455_v43 = vshll.u32 %v1987_v2, %v449_v34  ;;  %v462_v46 = vshrl.u32 %v1990_v8, %v450_v29  ;;  %v465_v48 = vshrl.u32 %v1991_v16, %v450_v29  ;;  %v453_v57 = vshrl.u32 %v1987_v2, %v450_v29 }
  0xdd   :  { %v211_v33 = vsel %vm128_vm0, %v210_v0, %v209_v21  ;;  %v2290_v1 = vsub.s32 %v392_v15, %v395_v42  ;;  %v458_v26 = vshll.u32 %v1988_v4, %v449_v34  ;;  %v452_v47 = vshll.u32 %v1986_v62, %v449_v34 }
  0xde   :  { %v214_v41 = vsel %vm2203_vm5, %v2056_v32, %v211_v33  ;;  %v461_v63 = vshll.u32 %v1989_v6, %v449_v34  ;;  %v464_v58 = vshll.u32 %v1990_v8, %v449_v34  ;;  %v457_v52 = vor.u32 %v456_v44, %v455_v43 }
  0xdf   :  { %1931 = vcosq.f32 %v214_v41  ;;  %v398_v54 = vsub.s32 0, %v2290_v1  ;;  %v460_v7 = vor.u32 %v459_v40, %v458_v26  ;;  %vm224_vm0 = vcmp.eq.s32.totalorder %v2264_v51, 2 }
  0xe0   :  { %1933 = vsinq.f32 %v214_v41  ;;  %vm1049_vm1 = vcmp.eq.s32.totalorder %v2266_v36, 2  ;;  %v463_v25 = vor.u32 %v462_v46, %v461_v63  ;;  %v466_v10 = vor.u32 %v465_v48, %v464_v58 }
  0xe1   :  { %v1928_v49 = vpop.eup %1927  ;;  %vm221_vm2 = vcmp.eq.s32.totalorder %v2264_v51, 0  ;;  %vm1046_vm3 = vcmp.eq.s32.totalorder %v2266_v36, 0  ;;  %v1825_v5 = vmin.u32 %v398_v54, %v2290_v1  ;;  %v454_v53 = vor.u32 %v453_v57, %v452_v47 }
  0xe2   :  { %v1930_v50 = vpop.eup %1929  ;;  %v328_v55 = vxor.u32 2147483648, %v1928_v49  ;;  %vm220_vm4 = vcmp.lt.s32.totalorder %v2264_v51, 2  ;;  %vm1045_vm5 = vcmp.lt.s32.totalorder %v2266_v36, 2  ;;  %v451_v15 = vshrl.u32 %v1986_v62, %v450_v29 }
  0xe3   :  { %v325_v30 = vxor.u32 2147483648, %v1930_v50  ;;  %vm467_vm6 = vcmp.lt.s32.totalorder %v2278_v38, 1  ;;  %vm218_vm7 = vweird.f32 %v2056_v32  ;;  %v400_v9 = vclz %v1825_v5 }
  0xe4   :  { %v329_v12 = vsel %vm327_vm10, %v328_v55, %v1930_v50  ;;  %v1155_v3 = vsel %vm1153_vm12, %v328_v55, %v1930_v50  ;;  %vm470_vm8 = vcmp.lt.s32.totalorder %v2278_v38, 4  ;;  %v479_v21 = vsel %vm467_vm6, %v457_v52, %v460_v7 }
  0xe5   :  { %v326_v59 = vsel %vm324_vm9, %v1928_v49, %v325_v30  ;;  %v1152_v37 = vsel %vm1150_vm11, %v1928_v49, %v325_v30  ;;  %vm468_vm9 = vcmp.lt.s32.totalorder %v2278_v38, 2  ;;  %v476_v11 = vsel %vm470_vm8, %v463_v25, 920167782 }
  0xe6   :  { %v330_v61 = vsel %vm323_vm13, %v326_v59, %v329_v12  ;;  %v1156_v17 = vsel %vm1149_vm14, %v1152_v37, %v1155_v3  ;;  %v480_v28 = vsel %vm470_vm8, %v466_v10, 1326507024  ;;  %v1826_v29 = vadd.s32 4294967294, %v400_v9  ;;  %v96_v3 = vpop.permute.xlu0 %95 }
  0xe7   :  { %v331_v20 = vsel %vm321_vm15, nan, %v330_v61  ;;  %v1157_v34 = vsel %vm321_vm15, nan, %v1156_v17  ;;  %v418_v0 = vsub.s32 4, %v2268_v19  ;;  %vm469_vm10 = vcmp.lt.s32.totalorder %v2278_v38, 3 }
  0xe8   :  { %1783 = vst [vmem:[#allocation2 + $0x10] sm:$0xff] %v331_v20  ;;  %1791 = vst [vmem:[#allocation2 + $0x18] sm:$0xff] %v1157_v34  ;;  %v471_v31 = vsel %vm467_vm6, %v451_v15, %v454_v53  ;;  %v472_v41 = vsel %vm470_vm8, %v460_v7, 2102212464  ;;  %v475_v42 = vsel %vm467_vm6, %v454_v53, %v457_v52  ;;  %v477_v44 = vsel %vm469_vm10, %v460_v7, %v476_v11  ;;  %v100_v34 = vpop.permute.xlu1 %99 }
  0xe9   :  { %v1932_v33 = vpop.eup %1931  ;;  %v481_v40 = vsel %vm469_vm10, %v463_v25, %v480_v28  ;;  %vm1827_vm11 = vcmp.lt.s32.totalorder %v1826_v29, 0  ;;  %v542_v49 = vshrl.u32 %v541_v39, 23  ;;  %v473_v30 = vsel %vm469_vm10, %v457_v52, %v472_v41 }
  0xea   :  { %v1934_v43 = vpop.eup %1933  ;;  %v225_v46 = vxor.u32 2147483648, %v1932_v33  ;;  %v482_v48 = vsel %vm468_vm9, %v479_v21, %v481_v40  ;;  %v403_v26 = vsel %vm1827_vm11, 0, %v1826_v29  ;;  %v478_v12 = vsel %vm468_vm9, %v475_v42, %v477_v44 }
  0xeb   :  { %v222_v57 = vxor.u32 2147483648, %v1934_v43  ;;  %v2343_v50 = vmul.u32.u64.low %v2270_v14, %v482_v48  ;;  %v2344_v55 = vmul.u32.u64.high %v2270_v14, %v482_v48, %v2343_v50  ;;  %v404_v58 = vsub.s32 32, %v403_v26 }
  0xec   :  { %v226_v47 = vsel %vm224_vm0, %v225_v46, %v1934_v43  ;;  %v1051_v63 = vsel %vm1049_vm1, %v225_v46, %v1934_v43  ;;  %v408_v7 = vsub.s32 4294967266, %v403_v26  ;;  %v1832_v52 = vadd.s32 4294967169, %v542_v49 }
  0xed   :  { %v223_v54 = vsel %vm221_vm2, %v1932_v33, %v222_v57  ;;  %v1048_v39 = vsel %vm1046_vm3, %v1932_v33, %v222_v57  ;;  %v406_v59 = vshrl.u32 %v2276_v35, %v404_v58  ;;  %v405_v53 = vshll.u32 %v2290_v1, %v403_v26 }
  0xee   :  { %v227_v25 = vsel %vm220_vm4, %v223_v54, %v226_v47  ;;  %v1052_v10 = vsel %vm1045_vm5, %v1048_v39, %v1051_v63  ;;  %v409_v61 = vadd.s32 127, %v408_v7  ;;  %v548_v36 = vadd.s32 1, %v1832_v52 }
  0xef   :  { %v228_v37 = vsel %vm218_vm7, nan, %v227_v25  ;;  %v1053_v5 = vsel %vm218_vm7, nan, %v1052_v10  ;;  %v2369_v51 = vmul.u32.u64.low %v2270_v14, %v478_v12  ;;  %v2370_v17 = vmul.u32.u64.high %v2270_v14, %v478_v12, %v2369_v51 }
  0xf0   :  { %1782 = vst [vmem:[#allocation2] sm:$0xff] %v228_v37  ;;  %1790 = vst [vmem:[#allocation2 + $0x8] sm:$0xff] %v1053_v5  ;;  %v115_v35 = vmul.f32 %v2050_v24, %v96_v3  ;;  %v407_v15 = vor.u32 %v406_v59, %v405_v53  ;;  %v410_v20 = vshll.u32 %v409_v61, 23  ;;  %vm334_vm12 = vcmp.lt.s32.totalorder %v2067_v45, 0 }
  0xf1   :  { %v474_v32 = vsel %vm468_vm9, %v471_v31, %v473_v30  ;;  %v538_v1 = vand.u32 2147483647, %v2256_v27  ;;  %vm549_vm13 = vcmp.gt.s32.totalorder %v548_v36, 0  ;;  %v419_v11 = vsel %vm334_vm12, %v418_v0, %v2268_v19 }
  0xf2   :  { %v411_v9 = vor.u32 4788187, %v410_v20  ;;  %vm492_vm14 = vc.u32 %v2344_v55, %v2369_v51  ;;  %v550_v21 = vsel %vm549_vm13, %v548_v36, 0  ;;  %vm2385_vm15 = vcmp.le.f32.partialorder %v332_v60, 0.7853982 }
  0xf3   :  { %v493_v38 = vadd.s32 1, %v2370_v17  ;;  %v552_v29 = vand.u32 31, %v550_v21  ;;  %v2391_v31 = vadd.f32 %v115_v35, %v2039_v18  ;;  %v414_v41 = vcvt.s32.f32 %v407_v15 }
  0xf4   :  { %v412_v33 = vand.u32 2147483647, %v411_v9  ;;  %v490_v19 = vmul.u32 %v2270_v14, %v474_v32  ;;  %v2395_v0 = vmul.f32 %v2050_v24, %v100_v34  ;;  %v421_v42 = vsel %vm2385_vm15, 0, %v419_v11 }
  0xf5   :  { %v494_v60 = vsel %vm492_vm14, %v493_v38, %v2370_v17  ;;  %v545_v44 = vand.u32 8388607, %v538_v1  ;;  %v553_v40 = vsub.s32 32, %v552_v29  ;;  %v2402_v18 = vshrl.u32 %v550_v21, 5 }
  0xf6   :  { %v415_v43 = vmul.f32 %v414_v41, %v412_v33  ;;  %v495_v46 = vadd.s32 %v494_v60, %v490_v19  ;;  %v555_v48 = vshll.u32 %v1986_v62, %v552_v29  ;;  %v558_v24 = vshll.u32 %v1987_v2, %v552_v29 }
  0xf7   :  { %v556_v14 = vshrl.u32 %v1987_v2, %v553_v40  ;;  %v559_v49 = vshrl.u32 %v1988_v4, %v553_v40  ;;  %v562_v57 = vshrl.u32 %v1989_v6, %v553_v40  ;;  %v564_v47 = vshll.u32 %v1989_v6, %v552_v29 }
  0xf8   :  { %v416_v26 = vxor.u32 2147483648, %v415_v43  ;;  %v496_v50 = vadd.s32 536870912, %v495_v46  ;;  %v565_v63 = vshrl.u32 %v1990_v8, %v553_v40  ;;  %v561_v54 = vshll.u32 %v1988_v4, %v552_v29 }
  0xf9   :  { %v557_v58 = vor.u32 %v556_v14, %v555_v48  ;;  %v560_v30 = vor.u32 %v559_v49, %v558_v24  ;;  %v568_v39 = vshrl.u32 %v1991_v16, %v553_v40  ;;  %v1251_v12 = vadd.s32 3, %v421_v42 }
  0xfa   :  { %v417_v7 = vsel %vm334_vm12, %v416_v26, %v415_v43  ;;  %v497_v3 = vshrl.u32 %v496_v50, 30  ;;  %v566_v25 = vor.u32 %v565_v63, %v564_v47  ;;  %v546_v59 = vor.u32 8388608, %v545_v44 }
  0xfb   :  { %v420_v10 = vsel %vm2385_vm15, %v2067_v45, %v417_v7  ;;  %v563_v52 = vor.u32 %v562_v57, %v561_v54  ;;  %v567_v37 = vshll.u32 %v1990_v8, %v552_v29  ;;  %v2419_v5 = vand.u32 3, %v421_v42 }
  0xfc   :  { %1935 = vcosq.f32 %v420_v10  ;;  %vm437_vm0 = vcmp.lt.s32.totalorder %v2147_v56, 0  ;;  %v498_v53 = vshll.u32 %v497_v3, 30  ;;  %vm570_vm1 = vcmp.lt.s32.totalorder %v2402_v18, 1 }
  0xfd   :  { %1937 = vsinq.f32 %v420_v10  ;;  %v569_v61 = vor.u32 %v568_v39, %v567_v37  ;;  %vm573_vm2 = vcmp.lt.s32.totalorder %v2402_v18, 4  ;;  %v578_v17 = vsel %vm570_vm1, %v557_v58, %v560_v30 }
  0xfe   :  { %v1252_v36 = vand.u32 3, %v1251_v12  ;;  %v2426_v35 = vsub.s32 %v495_v46, %v498_v53  ;;  %vm572_vm3 = vcmp.lt.s32.totalorder %v2402_v18, 3  ;;  %v579_v15 = vsel %vm573_vm2, %v566_v25, 920167782 }
  0xff   :  { %vm2433_vm4 = vcmp.le.f32.partialorder %v435_v13, 0.7853982  ;;  %vm571_vm5 = vcmp.lt.s32.totalorder %v2402_v18, 2  ;;  %v580_v32 = vsel %vm572_vm3, %v563_v52, %v579_v15  ;;  %v2440_v34 = vshll.u32 %v546_v59, 8 }
 0x100   :  { %v644_v9 = vand.u32 2139095040, %v2391_v31  ;;  %v501_v11 = vsub.s32 0, %v2426_v35  ;;  %v521_v21 = vsub.s32 4, %v497_v3  ;;  %v575_v28 = vsel %vm573_vm2, %v563_v52, 2102212464 }
 0x101   :  { %v581_v13 = vsel %vm571_vm5, %v578_v17, %v580_v32  ;;  %v582_v38 = vsel %vm570_vm1, %v560_v30, %v563_v52  ;;  %v583_v29 = vsel %vm573_vm2, %v569_v61, 1326507024  ;;  %vm426_vm6 = vcmp.lt.s32.totalorder %v2419_v5, 2 }
 0x102   :  { %v2453_v33 = vmul.u32.u64.low %v2440_v34, %v581_v13  ;;  %v2454_v41 = vmul.u32.u64.high %v2440_v34, %v581_v13, %v2453_v33  ;;  %vm427_vm7 = vcmp.eq.s32.totalorder %v2419_v5, 0  ;;  %v1829_v19 = vmin.u32 %v501_v11, %v2426_v35 }
 0x103   :  { %v554_v42 = vshrl.u32 %v1986_v62, %v553_v40  ;;  %vm424_vm8 = vweird.f32 %v2067_v45  ;;  %vm430_vm9 = vcmp.eq.s32.totalorder %v2419_v5, 2  ;;  %v584_v60 = vsel %vm572_vm3, %v566_v25, %v583_v29 }
 0x104   :  { %v641_v44 = vand.u32 2147483647, %v2391_v31  ;;  %v645_v43 = vshrl.u32 %v644_v9, 23  ;;  %v503_v46 = vclz %v1829_v19  ;;  %v576_v14 = vsel %vm572_vm3, %v560_v30, %v575_v28 }
 0x105   :  { %v574_v48 = vsel %vm570_vm1, %v554_v42, %v557_v58  ;;  %v585_v40 = vsel %vm571_vm5, %v582_v38, %v584_v60  ;;  %vm1253_vm10 = vcmp.lt.s32.totalorder %v1252_v36, 2  ;;  %vm1254_vm11 = vcmp.eq.s32.totalorder %v1252_v36, 0 }
 0x106   :  { %vm1257_vm12 = vcmp.eq.s32.totalorder %v1252_v36, 2  ;;  %v522_v24 = vsel %vm437_vm0, %v521_v21, %v497_v3  ;;  %v1936_v49 = vpop.eup %1935  ;;  %v1830_v57 = vadd.s32 4294967294, %v503_v46  ;;  %v1836_v47 = vadd.s32 4294967169, %v645_v43 }
 0x107   :  { %v2475_v26 = vmul.u32.u64.low %v2440_v34, %v585_v40  ;;  %v2476_v50 = vmul.u32.u64.high %v2440_v34, %v585_v40, %v2475_v26  ;;  %v1938_v63 = vpop.eup %1937  ;;  %v431_v58 = vxor.u32 2147483648, %v1936_v49  ;;  %v491_v30 = vadd.s32 %v2369_v51, %v2344_v55 }
 0x108   :  { %v577_v54 = vsel %vm571_vm5, %v574_v48, %v576_v14  ;;  %v648_v39 = vand.u32 8388607, %v641_v44  ;;  %v428_v7 = vxor.u32 2147483648, %v1938_v63  ;;  %vm1831_vm13 = vcmp.lt.s32.totalorder %v1830_v57, 0 }
 0x109   :  { %v524_v12 = vsel %vm2433_vm4, 0, %v522_v24  ;;  %v596_v3 = vadd.s32 1, %v2454_v41  ;;  %v432_v25 = vsel %vm430_vm9, %v431_v58, %v1938_v63  ;;  %v1259_v10 = vsel %vm1257_vm12, %v431_v58, %v1938_v63 }
 0x10a   :  { %v506_v59 = vsel %vm1831_vm13, 0, %v1830_v57  ;;  %v651_v55 = vadd.s32 1, %v1836_v47  ;;  %v429_v51 = vsel %vm427_vm7, %v1936_v49, %v428_v7  ;;  %v1256_v18 = vsel %vm1254_vm11, %v1936_v49, %v428_v7 }
 0x10b   :  { %v507_v52 = vsub.s32 32, %v506_v59  ;;  %v593_v37 = vmul.u32 %v2440_v34, %v577_v54  ;;  %v433_v53 = vsel %vm426_vm6, %v429_v51, %v432_v25  ;;  %v1260_v61 = vsel %vm1253_vm10, %v1256_v18, %v1259_v10 }
 0x10c   :  { %v511_v17 = vsub.s32 4294967266, %v506_v59  ;;  %v2499_v15 = vadd.f32 %v2395_v0, %v2045_v23  ;;  %v434_v32 = vsel %vm424_vm8, nan, %v433_v53  ;;  %v1261_v9 = vsel %vm424_vm8, nan, %v1260_v61 }
 0x10d   :  { %v509_v11 = vshrl.u32 %v491_v30, %v507_v52  ;;  %vm595_vm14 = vc.u32 %v2476_v50, %v2453_v33  ;;  %1784 = vst [vmem:[#allocation2 + $0x20] sm:$0xff] %v434_v32  ;;  %1792 = vst [vmem:[#allocation2 + $0x28] sm:$0xff] %v1261_v9  ;;  %v508_v5 = vshll.u32 %v2426_v35, %v506_v59  ;;  %vm652_vm15 = vcmp.gt.s32.totalorder %v651_v55, 0 }
 0x10e   :  { %v512_v36 = vadd.s32 127, %v511_v17  ;;  %v597_v34 = vsel %vm595_vm14, %v596_v3, %v2454_v41  ;;  %v653_v0 = vsel %vm652_vm15, %v651_v55, 0  ;;  %v1355_v13 = vadd.s32 3, %v524_v12 }
 0x10f   :  { %v598_v23 = vadd.s32 %v597_v34, %v593_v37  ;;  %v510_v21 = vor.u32 %v509_v11, %v508_v5  ;;  %v655_v38 = vand.u32 31, %v653_v0  ;;  %v649_v29 = vor.u32 8388608, %v648_v39 }
 0x110   :  { %v513_v28 = vshll.u32 %v512_v36, 23  ;;  %v747_v19 = vand.u32 2139095040, %v2499_v15  ;;  %v744_v35 = vand.u32 2147483647, %v2499_v15  ;;  %v2513_v41 = vand.u32 3, %v524_v12 }
 0x111   :  { %v599_v45 = vadd.s32 536870912, %v598_v23  ;;  %v656_v60 = vsub.s32 32, %v655_v38  ;;  %v517_v48 = vcvt.s32.f32 %v510_v21  ;;  %v2515_v14 = vand.u32 3, %v1355_v13 }
 0x112   :  { %v514_v42 = vor.u32 4788187, %v513_v28  ;;  %v2519_v40 = vadd.s32 %v2453_v33, %v2476_v50  ;;  %v2522_v49 = vshll.u32 %v649_v29, 8  ;;  %v748_v57 = vshrl.u32 %v747_v19, 23 }
 0x113   :  { %v2510_v43 = vshrl.u32 %v599_v45, 30  ;;  %v659_v47 = vshrl.u32 %v1987_v2, %v656_v60  ;;  %v662_v63 = vshrl.u32 %v1988_v4, %v656_v60  ;;  %v665_v58 = vshrl.u32 %v1989_v6, %v656_v60 }
 0x114   :  { %v515_v46 = vand.u32 2147483647, %v514_v42  ;;  %v668_v54 = vshrl.u32 %v1990_v8, %v656_v60  ;;  %v671_v39 = vshrl.u32 %v1991_v16, %v656_v60  ;;  %v2533_v33 = vand.u32 8388607, %v744_v35 }
 0x115   :  { %v601_v24 = vshll.u32 %v2510_v43, 30  ;;  %v658_v7 = vshll.u32 %v1986_v62, %v655_v38  ;;  %v661_v12 = vshll.u32 %v1987_v2, %v655_v38  ;;  %v664_v3 = vshll.u32 %v1988_v4, %v655_v38 }
 0x116   :  { %v518_v26 = vmul.f32 %v517_v48, %v515_v46  ;;  %v654_v10 = vshrl.u32 %v653_v0, 5  ;;  %v667_v59 = vshll.u32 %v1989_v6, %v655_v38  ;;  %v670_v55 = vshll.u32 %v1990_v8, %v655_v38 }
 0x117   :  { %v2527_v30 = vsub.s32 %v598_v23, %v601_v24  ;;  %vm540_vm1 = vcmp.lt.s32.totalorder %v2256_v27, 0  ;;  %v660_v18 = vor.u32 %v659_v47, %v658_v7  ;;  %v663_v52 = vor.u32 %v662_v63, %v661_v12 }
 0x118   :  { %v519_v50 = vxor.u32 2147483648, %v518_v26  ;;  %v666_v37 = vor.u32 %v665_v58, %v664_v3  ;;  %v669_v17 = vor.u32 %v668_v54, %v667_v59  ;;  %v672_v32 = vor.u32 %v671_v39, %v670_v55 }
 0x119   :  { %v604_v25 = vsub.s32 0, %v2527_v30  ;;  %v624_v9 = vsub.s32 4, %v2510_v43  ;;  %v657_v11 = vshrl.u32 %v1986_v62, %v656_v60  ;;  %v1840_v5 = vadd.s32 4294967169, %v748_v57 }
 0x11a   :  { %v520_v51 = vsel %vm437_vm0, %v519_v50, %v518_v26  ;;  %vm2552_vm0 = vcmp.le.f32.partialorder %v538_v1, 0.7853982  ;;  %vm673_vm2 = vcmp.lt.s32.totalorder %v654_v10, 1  ;;  %vm676_vm3 = vcmp.lt.s32.totalorder %v654_v10, 4 }
 0x11b   :  { %v523_v53 = vsel %vm2433_vm4, %v2147_v56, %v520_v51  ;;  %v1833_v61 = vmin.u32 %v604_v25, %v2527_v30  ;;  %vm674_vm4 = vcmp.lt.s32.totalorder %v654_v10, 2  ;;  %vm675_vm5 = vcmp.lt.s32.totalorder %v654_v10, 3 }
 0x11c   :  { %1939 = vcosq.f32 %v523_v53  ;;  %v678_v20 = vsel %vm676_vm3, %v666_v37, 2102212464  ;;  %v681_v23 = vsel %vm673_vm2, %v660_v18, %v663_v52  ;;  %v682_v21 = vsel %vm676_vm3, %v669_v17, 920167782 }
 0x11d   :  { %1941 = vsinq.f32 %v523_v53  ;;  %v606_v34 = vclz %v1833_v61  ;;  %v685_v28 = vsel %vm673_vm2, %v663_v52, %v666_v37  ;;  %v686_v13 = vsel %vm676_vm3, %v672_v32, 1326507024 }
 0x11e   :  { %vm533_vm6 = vcmp.eq.s32.totalorder %v2513_v41, 2  ;;  %v677_v38 = vsel %vm673_vm2, %v657_v11, %v660_v18  ;;  %v683_v45 = vsel %vm675_vm5, %v666_v37, %v682_v21  ;;  %v687_v29 = vsel %vm675_vm5, %v669_v17, %v686_v13 }
 0x11f   :  { %v1834_v0 = vadd.s32 4294967294, %v606_v34  ;;  %v754_v1 = vadd.s32 1, %v1840_v5  ;;  %vm530_vm7 = vcmp.eq.s32.totalorder %v2513_v41, 0  ;;  %v679_v19 = vsel %vm675_vm5, %v663_v52, %v678_v20 }
 0x120   :  { %v684_v42 = vsel %vm674_vm4, %v681_v23, %v683_v45  ;;  %v688_v60 = vsel %vm674_vm4, %v685_v28, %v687_v29  ;;  %vm529_vm9 = vcmp.lt.s32.totalorder %v2513_v41, 2  ;;  %vm1357_vm10 = vcmp.lt.s32.totalorder %v2515_v14, 2 }
 0x121   :  { %vm1835_vm8 = vcmp.lt.s32.totalorder %v1834_v0, 0  ;;  %v2563_v48 = vmul.u32.u64.low %v2522_v49, %v688_v60  ;;  %v2564_v24 = vmul.u32.u64.high %v2522_v49, %v688_v60, %v2563_v48  ;;  %vm755_vm11 = vcmp.gt.s32.totalorder %v754_v1, 0 }
 0x122   :  { %v609_v46 = vsel %vm1835_vm8, 0, %v1834_v0  ;;  %vm527_vm12 = vweird.f32 %v2147_v56  ;;  %v625_v47 = vsel %vm540_vm1, %v624_v9, %v2510_v43  ;;  %v756_v63 = vsel %vm755_vm11, %v754_v1, 0  ;;  %v104_v1 = vpop.permute.xlu0 %103 }
 0x123   :  { %v610_v57 = vsub.s32 32, %v609_v46  ;;  %v614_v26 = vsub.s32 4294967266, %v609_v46  ;;  %vm1358_vm13 = vcmp.eq.s32.totalorder %v2515_v14, 0  ;;  %v758_v39 = vand.u32 31, %v756_v63 }
 0x124   :  { %v2572_v58 = vmul.u32.u64.low %v2522_v49, %v684_v42  ;;  %v2573_v54 = vmul.u32.u64.high %v2522_v49, %v684_v42, %v2572_v58  ;;  %v611_v50 = vshll.u32 %v2527_v30, %v609_v46  ;;  %v680_v3 = vsel %vm674_vm4, %v677_v38, %v679_v19 }
 0x125   :  { %v612_v7 = vshrl.u32 %v2519_v40, %v610_v57  ;;  %v615_v12 = vadd.s32 127, %v614_v26  ;;  %vm1361_vm14 = vcmp.eq.s32.totalorder %v2515_v14, 2  ;;  %v627_v43 = vsel %vm2552_vm0, 0, %v625_v47 }
 0x126   :  { %v1940_v25 = vpop.eup %1939  ;;  %v752_v59 = vor.u32 8388608, %v2533_v33  ;;  %v2583_v55 = vsub.s32 32, %v758_v39  ;;  %vm698_vm15 = vc.u32 %v2564_v24, %v2572_v58  ;;  %v696_v30 = vmul.u32 %v2522_v49, %v680_v3 }
 0x127   :  { %v1942_v51 = vpop.eup %1941  ;;  %v534_v18 = vxor.u32 2147483648, %v1940_v25  ;;  %v613_v52 = vor.u32 %v612_v7, %v611_v50  ;;  %v616_v37 = vshll.u32 %v615_v12, 23  ;;  %v699_v10 = vadd.s32 1, %v2573_v54  ;;  %v1959_v50 = vld [vmem:[%s2818_s1 + $0x1] ss:$0 sm:$0xff]  ;;  %s1992_s1 = smov [#allocation2]  }
 0x128   :  { %v531_v40 = vxor.u32 2147483648, %v1942_v51  ;;  %v2589_v53 = vshrl.u32 %v756_v63, 5  ;;  %v762_v32 = vshrl.u32 %v1987_v2, %v2583_v55  ;;  %v761_v13 = vshll.u32 %v1986_v62, %v758_v39  ;;  %s1803_s30 = sshll.u32 %s1992_s1, 4  ;;  %s1804_s30 = int_to_ptr.vmem [resolvable:$true] %s1803_s30 }
 0x129   :  { %v535_v61 = vsel %vm533_vm6, %v534_v18, %v1942_v51  ;;  %v1363_v33 = vsel %vm1361_vm14, %v534_v18, %v1942_v51  ;;  %v617_v17 = vor.u32 4788187, %v616_v37  ;;  %v620_v5 = vcvt.s32.f32 %v613_v52  ;;  %s1960_s3 = scalar_lea.vmem %s1804_s30, 2048  ;;  %p1965_p1 = scmp.lt.s32.totalorder %s1804_s30, %s1804_s30 }
 0x12a   :  { %v532_v9 = vsel %vm530_vm7, %v1940_v25, %v531_v40  ;;  %v1360_v11 = vsel %vm1358_vm13, %v1940_v25, %v531_v40  ;;  %v700_v49 = vsel %vm698_vm15, %v699_v10, %v2573_v54  ;;  %v765_v38 = vshrl.u32 %v1988_v4, %v2583_v55  ;;  %p1961_p0 = scmp.ne.s32.totalorder %s1804_s30, %s1960_s3  ;;  %p1966_p2 = scmp.lt.s32.totalorder %s1960_s3, %s1960_s3 }
 0x12b   :  { %v536_v34 = vsel %vm529_vm9, %v532_v9, %v535_v61  ;;  %v1364_v20 = vsel %vm1357_vm10, %v1360_v11, %v1363_v33  ;;  %v618_v23 = vand.u32 2147483647, %v617_v17  ;;  %v701_v0 = vadd.s32 %v700_v49, %v696_v30 }
 0x12c   :  { %v537_v21 = vsel %vm527_vm12, nan, %v536_v34  ;;  %v1365_v28 = vsel %vm527_vm12, nan, %v1364_v20  ;;  %v764_v14 = vshll.u32 %v1987_v2, %v758_v39  ;;  %v768_v29 = vshrl.u32 %v1989_v6, %v2583_v55  ;;  %p1967_p3 = por %p1966_p2, %p1965_p1 }
 0x12d   :  { %1785 = vst [vmem:[#allocation2 + $0x30] sm:$0xff] %v537_v21  ;;  %1793 = vst [vmem:[#allocation2 + $0x38] sm:$0xff] %v1365_v28  ;;  %v621_v41 = vmul.f32 %v620_v5, %v618_v23  ;;  %v702_v45 = vadd.s32 536870912, %v701_v0  ;;  %v767_v19 = vshll.u32 %v1988_v4, %v758_v39  ;;  %v770_v56 = vshll.u32 %v1989_v6, %v758_v39 }
 0x12e   :  { %v771_v42 = vshrl.u32 %v1990_v8, %v2583_v55  ;;  %v774_v60 = vshrl.u32 %v1991_v16, %v2583_v55  ;;  %v763_v57 = vor.u32 %v762_v32, %v761_v13  ;;  %v766_v26 = vor.u32 %v765_v38, %v764_v14  ;;  %p1968_p4 = pnand %p1967_p3, %p1961_p0 }
 0x12f   :  { %v622_v46 = vxor.u32 2147483648, %v621_v41  ;;  %v2620_v48 = vshrl.u32 %v702_v45, 30  ;;  %v769_v47 = vor.u32 %v768_v29, %v767_v19  ;;  %v773_v54 = vshll.u32 %v1990_v8, %v758_v39 }
 0x130   :  { %v772_v63 = vor.u32 %v771_v42, %v770_v56  ;;  %v117_v7 = vmul.f32 %v1959_v50, %v104_v1  ;;  %v2628_v3 = vand.u32 3, %v627_v43  ;;  %v1459_v25 = vadd.s32 3, %v627_v43 }
 0x131   :  { %v623_v12 = vsel %vm540_vm1, %v622_v46, %v621_v41  ;;  %v704_v51 = vshll.u32 %v2620_v48, 30  ;;  %v775_v52 = vor.u32 %v774_v60, %v773_v54  ;;  %vm776_vm2 = vcmp.lt.s32.totalorder %v2589_v53, 1 }
 0x132   :  { %v626_v18 = vsel %vm2552_vm0, %v2256_v27, %v623_v12  ;;  %v2635_v39 = vshll.u32 %v752_v59, 8  ;;  %vm779_vm3 = vcmp.lt.s32.totalorder %v2589_v53, 4  ;;  %v784_v40 = vsel %vm776_vm2, %v763_v57, %v766_v26 }
 0x133   :  { %1943 = vcosq.f32 %v626_v18  ;;  %v2637_v37 = vsub.s32 %v701_v0, %v704_v51  ;;  %vm778_vm1 = vcmp.lt.s32.totalorder %v2589_v53, 3  ;;  %v781_v43 = vsel %vm779_vm3, %v769_v47, 2102212464 }
 0x134   :  { %1945 = vsinq.f32 %v626_v18  ;;  %v785_v30 = vsel %vm779_vm3, %v772_v63, 920167782  ;;  %v760_v10 = vshrl.u32 %v1986_v62, %v2583_v55  ;;  %vm777_vm0 = vcmp.lt.s32.totalorder %v2589_v53, 2 }
 0x135   :  { %v707_v36 = vsub.s32 0, %v2637_v37  ;;  %v786_v59 = vsel %vm778_vm1, %v769_v47, %v785_v30  ;;  %v788_v33 = vsel %vm776_vm2, %v766_v26, %v769_v47  ;;  %v789_v17 = vsel %vm779_vm3, %v775_v52, 1326507024 }
 0x136   :  { %v787_v61 = vsel %vm777_vm0, %v784_v40, %v786_v59  ;;  %v2652_v32 = vadd.f32 %v117_v7, %v2043_v22  ;;  %v780_v11 = vsel %vm776_vm2, %v760_v10, %v763_v57  ;;  %v782_v5 = vsel %vm778_vm1, %v766_v26, %v781_v43 }
 0x137   :  { %v1837_v9 = vmin.u32 %v707_v36, %v2637_v37  ;;  %v1460_v55 = vand.u32 3, %v1459_v25  ;;  %v790_v49 = vsel %vm778_vm1, %v772_v63, %v789_v17  ;;  %vm630_vm4 = vweird.f32 %v2256_v27 }
 0x138   :  { %v2658_v34 = vmul.u32.u64.low %v2635_v39, %v787_v61  ;;  %v2659_v20 = vmul.u32.u64.high %v2635_v39, %v787_v61, %v2658_v34  ;;  %v791_v0 = vsel %vm777_vm0, %v788_v33, %v790_v49  ;;  %vm632_vm5 = vcmp.lt.s32.totalorder %v2628_v3, 2 }
 0x139   :  { %v709_v23 = vclz %v1837_v9  ;;  %vm633_vm6 = vcmp.eq.s32.totalorder %v2628_v3, 0  ;;  %v783_v22 = vsel %vm777_vm0, %v780_v11, %v782_v5  ;;  %v850_v21 = vand.u32 2139095040, %v2652_v32 }
 0x13a   :  { %vm636_vm7 = vcmp.eq.s32.totalorder %v2628_v3, 2  ;;  %vm643_vm8 = vcmp.lt.s32.totalorder %v2391_v31, 0  ;;  %v2673_v13 = vmul.u32.u64.low %v2635_v39, %v791_v0  ;;  %v2674_v38 = vmul.u32.u64.high %v2635_v39, %v791_v0, %v2673_v13 }
 0x13b   :  { %v1838_v28 = vadd.s32 4294967294, %v709_v23  ;;  %vm1461_vm9 = vcmp.lt.s32.totalorder %v1460_v55, 2  ;;  %vm1462_vm10 = vcmp.eq.s32.totalorder %v1460_v55, 0  ;;  %vm1465_vm11 = vcmp.eq.s32.totalorder %v1460_v55, 2 }
 0x13c   :  { %v851_v41 = vshrl.u32 %v850_v21, 23  ;;  %v697_v53 = vadd.s32 %v2572_v58, %v2564_v24  ;;  %v727_v14 = vsub.s32 4, %v2620_v48  ;;  %v799_v29 = vmul.u32 %v2635_v39, %v783_v22 }
 0x13d   :  { %v1944_v45 = vpop.eup %1943  ;;  %vm1839_vm12 = vcmp.lt.s32.totalorder %v1838_v28, 0  ;;  %v802_v42 = vadd.s32 1, %v2659_v20  ;;  %v847_v47 = vand.u32 2147483647, %v2652_v32  ;;  %vm801_vm13 = vc.u32 %v2674_v38, %v2658_v34 }
 0x13e   :  { %v1946_v1 = vpop.eup %1945  ;;  %v637_v19 = vxor.u32 2147483648, %v1944_v45  ;;  %v712_v56 = vsel %vm1839_vm12, 0, %v1838_v28  ;;  %v1844_v60 = vadd.s32 4294967169, %v851_v41  ;;  %v728_v3 = vsel %vm643_vm8, %v727_v14, %v2620_v48 }
 0x13f   :  { %v634_v46 = vxor.u32 2147483648, %v1946_v1  ;;  %v713_v57 = vsub.s32 32, %v712_v56  ;;  %v717_v26 = vsub.s32 4294967266, %v712_v56  ;;  %v714_v58 = vshll.u32 %v2637_v37, %v712_v56 }
 0x140   :  { %v638_v63 = vsel %vm636_vm7, %v637_v19, %v1946_v1  ;;  %v1467_v24 = vsel %vm1465_vm11, %v637_v19, %v1946_v1  ;;  %v803_v18 = vsel %vm801_vm13, %v802_v42, %v2659_v20  ;;  %v857_v52 = vadd.s32 1, %v1844_v60 }
 0x141   :  { %v635_v54 = vsel %vm633_vm6, %v1944_v45, %v634_v46  ;;  %v1464_v50 = vsel %vm1462_vm10, %v1944_v45, %v634_v46  ;;  %v715_v7 = vshrl.u32 %v697_v53, %v713_v57  ;;  %v718_v12 = vadd.s32 127, %v717_v26 }
 0x142   :  { %v639_v25 = vsel %vm632_vm5, %v635_v54, %v638_v63  ;;  %v1468_v51 = vsel %vm1461_vm9, %v1464_v50, %v1467_v24  ;;  %v804_v30 = vadd.s32 %v803_v18, %v799_v29  ;;  %vm858_vm14 = vcmp.gt.s32.totalorder %v857_v52, 0 }
 0x143   :  { %v640_v39 = vsel %vm630_vm4, nan, %v639_v25  ;;  %v1469_v37 = vsel %vm630_vm4, nan, %v1468_v51  ;;  %v716_v40 = vor.u32 %v715_v7, %v714_v58  ;;  %v719_v43 = vshll.u32 %v718_v12, 23 }
 0x144   :  { %1786 = vst [vmem:[#allocation2 + $0x40] sm:$0xff] %v640_v39  ;;  %1794 = vst [vmem:[#allocation2 + $0x48] sm:$0xff] %v1469_v37  ;;  %v859_v10 = vsel %vm858_vm14, %v857_v52, 0  ;;  %vm2704_vm15 = vcmp.le.f32.partialorder %v641_v44, 0.7853982  ;;  %v805_v27 = vadd.s32 536870912, %v804_v30  ;;  %vm733_vm6 = vweird.f32 %v2391_v31 }
 0x145   :  { %v720_v36 = vor.u32 4788187, %v719_v43  ;;  %v861_v61 = vand.u32 31, %v859_v10  ;;  %v723_v17 = vcvt.s32.f32 %v716_v40  ;;  %v730_v9 = vsel %vm2704_vm15, 0, %v728_v3 }
 0x146   :  { %v854_v48 = vand.u32 8388607, %v847_v47  ;;  %v2712_v11 = vshrl.u32 %v805_v27, 30  ;;  %v2714_v49 = vand.u32 3, %v730_v9  ;;  %v1563_v44 = vadd.s32 3, %v730_v9 }
 0x147   :  { %v721_v33 = vand.u32 2147483647, %v720_v36  ;;  %v862_v5 = vsub.s32 32, %v861_v61  ;;  %v2721_v13 = vshrl.u32 %v859_v10, 5  ;;  %v864_v14 = vshll.u32 %v1986_v62, %v861_v61 }
 0x148   :  { %v807_v20 = vshll.u32 %v2712_v11, 30  ;;  %v855_v0 = vor.u32 8388608, %v854_v48  ;;  %v867_v29 = vshll.u32 %v1987_v2, %v861_v61  ;;  %v870_v42 = vshll.u32 %v1988_v4, %v861_v61 }
 0x149   :  { %v724_v55 = vmul.f32 %v723_v17, %v721_v33  ;;  %v865_v22 = vshrl.u32 %v1987_v2, %v862_v5  ;;  %v868_v21 = vshrl.u32 %v1988_v4, %v862_v5  ;;  %v871_v41 = vshrl.u32 %v1989_v6, %v862_v5 }
 0x14a   :  { %v2719_v28 = vsub.s32 %v804_v30, %v807_v20  ;;  %v874_v45 = vshrl.u32 %v1990_v8, %v862_v5  ;;  %v877_v1 = vshrl.u32 %v1991_v16, %v862_v5  ;;  %v873_v60 = vshll.u32 %v1989_v6, %v861_v61 }
 0x14b   :  { %v725_v23 = vxor.u32 2147483648, %v724_v55  ;;  %v866_v46 = vor.u32 %v865_v22, %v864_v14  ;;  %v869_v57 = vor.u32 %v868_v21, %v867_v29  ;;  %v876_v26 = vshll.u32 %v1990_v8, %v861_v61 }
 0x14c   :  { %v810_v56 = vsub.s32 0, %v2719_v28  ;;  %v872_v63 = vor.u32 %v871_v41, %v870_v42  ;;  %v875_v16 = vor.u32 %v874_v45, %v873_v60  ;;  %v1564_v58 = vand.u32 3, %v1563_v44 }
 0x14d   :  { %v726_v53 = vsel %vm643_vm8, %v725_v23, %v724_v55  ;;  %v878_v24 = vor.u32 %v877_v1, %v876_v26  ;;  %vm879_vm2 = vcmp.lt.s32.totalorder %v2721_v13, 1  ;;  %v800_v4 = vadd.s32 %v2658_v34, %v2674_v38 }
 0x14e   :  { %v729_v19 = vsel %vm2704_vm15, %v2391_v31, %v726_v53  ;;  %v1841_v2 = vmin.u32 %v810_v56, %v2719_v28  ;;  %vm882_vm3 = vcmp.lt.s32.totalorder %v2721_v13, 4  ;;  %v887_v6 = vsel %vm879_vm2, %v866_v46, %v869_v57 }
 0x14f   :  { %1947 = vcosq.f32 %v729_v19  ;;  %v895_v50 = vshll.u32 %v855_v0, 8  ;;  %vm736_vm1 = vcmp.eq.s32.totalorder %v2714_v49, 0  ;;  %vm881_vm0 = vcmp.lt.s32.totalorder %v2721_v13, 3 }
 0x150   :  { %1949 = vsinq.f32 %v729_v19  ;;  %v812_v54 = vclz %v1841_v2  ;;  %v888_v7 = vsel %vm882_vm3, %v875_v16, 920167782  ;;  %v891_v12 = vsel %vm879_vm2, %v869_v57, %v872_v63 }
 0x151   :  { %vm735_vm4 = vcmp.lt.s32.totalorder %v2714_v49, 2  ;;  %vm880_vm5 = vcmp.lt.s32.totalorder %v2721_v13, 2  ;;  %v884_v34 = vsel %vm882_vm3, %v872_v63, 2102212464  ;;  %v889_v38 = vsel %vm881_vm0, %v872_v63, %v888_v7 }
 0x152   :  { %v1842_v8 = vadd.s32 4294967294, %v812_v54  ;;  %v892_v25 = vsel %vm882_vm3, %v878_v24, 1326507024  ;;  %v863_v51 = vshrl.u32 %v1986_v62, %v862_v5  ;;  %v890_v18 = vsel %vm880_vm5, %v887_v6, %v889_v38 }
 0x153   :  { %v893_v52 = vsel %vm881_vm0, %v875_v16, %v892_v25  ;;  %v2760_v40 = vmul.u32.u64.low %v895_v50, %v890_v18  ;;  %v2761_v43 = vmul.u32.u64.high %v895_v50, %v890_v18, %v2760_v40  ;;  %v885_v62 = vsel %vm881_vm0, %v869_v57, %v884_v34 }
 0x154   :  { %vm1843_vm7 = vcmp.lt.s32.totalorder %v1842_v8, 0  ;;  %v894_v37 = vsel %vm880_vm5, %v891_v12, %v893_v52  ;;  %v883_v36 = vsel %vm879_vm2, %v863_v51, %v866_v46  ;;  %vm739_vm8 = vcmp.eq.s32.totalorder %v2714_v49, 2 }
 0x155   :  { %v815_v39 = vsel %vm1843_vm7, 0, %v1842_v8  ;;  %vm1566_vm9 = vcmp.eq.s32.totalorder %v1564_v58, 0  ;;  %v2769_v59 = vmul.u32.u64.low %v895_v50, %v894_v37  ;;  %v2770_v27 = vmul.u32.u64.high %v895_v50, %v894_v37, %v2769_v59 }
 0x156   :  { %v816_v3 = vsub.s32 32, %v815_v39  ;;  %v820_v30 = vsub.s32 4294967266, %v815_v39  ;;  %v817_v17 = vshll.u32 %v2719_v28, %v815_v39  ;;  %vm1569_vm10 = vcmp.eq.s32.totalorder %v1564_v58, 2 }
 0x157   :  { %v886_v55 = vsel %vm880_vm5, %v883_v36, %v885_v62  ;;  %v905_v44 = vadd.s32 1, %v2761_v43  ;;  %vm1565_vm11 = vcmp.lt.s32.totalorder %v1564_v58, 2  ;;  %vm904_vm12 = vc.u32 %v2770_v27, %v2760_v40 }
 0x158   :  { %v818_v9 = vshrl.u32 %v800_v4, %v816_v3  ;;  %v821_v48 = vadd.s32 127, %v820_v30  ;;  %v902_v53 = vmul.u32 %v895_v50, %v886_v55  ;;  %v830_v60 = vsub.s32 4, %v2712_v11 }
 0x159   :  { %v1948_v10 = vpop.eup %1947  ;;  %v906_v1 = vsel %vm904_vm12, %v905_v44, %v2761_v43  ;;  %vm746_vm13 = vcmp.lt.s32.totalorder %v2499_v15, 0  ;;  %vm745_vm14 = vcmp.le.f32.partialorder %v744_v35, 0.7853982  ;;  %v903_v51 = vadd.s32 %v2760_v40, %v2770_v27 }
 0x15a   :  { %v1950_v61 = vpop.eup %1949  ;;  %v740_v33 = vxor.u32 2147483648, %v1948_v10  ;;  %v819_v0 = vor.u32 %v818_v9, %v817_v17  ;;  %v822_v22 = vshll.u32 %v821_v48, 23  ;;  %v907_v42 = vadd.s32 %v906_v1, %v902_v53 }
 0x15b   :  { %v737_v5 = vxor.u32 2147483648, %v1950_v61  ;;  %v831_v2 = vsel %vm746_vm13, %v830_v60, %v2712_v11  ;;  %vm849_vm7 = vcmp.lt.s32.totalorder %v2652_v32, 0 }
 0x15c   :  { %v741_v20 = vsel %vm739_vm8, %v740_v33, %v1950_v61  ;;  %v1571_v23 = vsel %vm1569_vm10, %v740_v33, %v1950_v61  ;;  %v823_v45 = vor.u32 4788187, %v822_v22  ;;  %v826_v56 = vcvt.s32.f32 %v819_v0 }
 0x15d   :  { %v738_v21 = vsel %vm736_vm1, %v1948_v10, %v737_v5  ;;  %v1568_v41 = vsel %vm1566_vm9, %v1948_v10, %v737_v5  ;;  %v908_v46 = vadd.s32 536870912, %v907_v42  ;;  %v833_v24 = vsel %vm745_vm14, 0, %v831_v2 }
 0x15e   :  { %v742_v28 = vsel %vm735_vm4, %v738_v21, %v741_v20  ;;  %v1572_v13 = vsel %vm1565_vm11, %v1568_v41, %v1571_v23  ;;  %v824_v19 = vand.u32 2147483647, %v823_v45  ;;  %v1667_v4 = vadd.s32 3, %v833_v24 }
 0x15f   :  { %v743_v14 = vsel %vm733_vm6, nan, %v742_v28  ;;  %v1573_v29 = vsel %vm733_vm6, nan, %v1572_v13  ;;  %v909_v26 = vshrl.u32 %v908_v46, 30  ;;  %v837_v50 = vand.u32 3, %v833_v24 }
 0x160   :  { %1787 = vst [vmem:[#allocation2 + $0x50] sm:$0xff] %v743_v14  ;;  %1795 = vst [vmem:[#allocation2 + $0x58] sm:$0xff] %v1573_v29  ;;  %v827_v49 = vmul.f32 %v826_v56, %v824_v19  ;;  %v1668_v7 = vand.u32 3, %v1667_v4  ;;  %vm836_vm6 = vweird.f32 %v2499_v15  ;;  %vm848_vm8 = vcmp.le.f32.partialorder %v847_v47, 0.7853982 }
 0x161   :  { %v910_v63 = vshll.u32 %v909_v26, 30  ;;  %vm838_vm15 = vcmp.lt.s32.totalorder %v837_v50, 2  ;;  %vm839_vm2 = vcmp.eq.s32.totalorder %v837_v50, 0  ;;  %vm842_vm3 = vcmp.eq.s32.totalorder %v837_v50, 2 }
 0x162   :  { %v828_v57 = vxor.u32 2147483648, %v827_v49  ;;  %vm1669_vm0 = vcmp.lt.s32.totalorder %v1668_v7, 2  ;;  %vm1673_vm4 = vcmp.eq.s32.totalorder %v1668_v7, 2  ;;  %vm1670_vm5 = vcmp.eq.s32.totalorder %v1668_v7, 0 }
 0x163   :  { %v911_v58 = vsub.s32 %v907_v42, %v910_v63  ;;  %v933_v55 = vsub.s32 4, %v909_v26 }
 0x164   :  { %v829_v31 = vsel %vm746_vm13, %v828_v57, %v827_v49 }
 0x165   :  { %v832_v16 = vsel %vm745_vm14, %v2499_v15, %v829_v31  ;;  %v913_v54 = vsub.s32 0, %v911_v58  ;;  %v934_v20 = vsel %vm849_vm7, %v933_v55, %v909_v26 }
 0x166   :  { %1951 = vcosq.f32 %v832_v16  ;;  %v936_v0 = vsel %vm848_vm8, 0, %v934_v20 }
 0x167   :  { %1953 = vsinq.f32 %v832_v16  ;;  %v1845_v6 = vmin.u32 %v913_v54, %v911_v58  ;;  %v1771_v22 = vadd.s32 3, %v936_v0  ;;  %v940_v21 = vand.u32 3, %v936_v0 }
 0x169   :  { %v915_v8 = vclz %v1845_v6  ;;  %v1772_v41 = vand.u32 3, %v1771_v22  ;;  %vm945_vm9 = vcmp.eq.s32.totalorder %v940_v21, 2  ;;  %vm942_vm11 = vcmp.eq.s32.totalorder %v940_v21, 0 }
 0x16a   :  { %vm941_vm13 = vcmp.lt.s32.totalorder %v940_v21, 2 }
 0x16b   :  { %v1846_v12 = vadd.s32 4294967294, %v915_v8  ;;  %vm1777_vm10 = vcmp.eq.s32.totalorder %v1772_v41, 2  ;;  %vm1774_vm12 = vcmp.eq.s32.totalorder %v1772_v41, 0  ;;  %vm1773_vm14 = vcmp.lt.s32.totalorder %v1772_v41, 2 }
 0x16d   :  { %vm1847_vm1 = vcmp.lt.s32.totalorder %v1846_v12, 0 }
 0x16e   :  { %v918_v38 = vsel %vm1847_vm1, 0, %v1846_v12 }
 0x16f   :  { %v919_v18 = vsub.s32 32, %v918_v38  ;;  %v923_v52 = vsub.s32 4294967266, %v918_v38  ;;  %v920_v43 = vshll.u32 %v911_v58, %v918_v38 }
 0x170   :  { %v1952_v34 = vpop.eup %1951 }
 0x171   :  { %v1954_v35 = vpop.eup %1953  ;;  %v843_v11 = vxor.u32 2147483648, %v1952_v34  ;;  %v921_v36 = vshrl.u32 %v903_v51, %v919_v18  ;;  %v924_v62 = vadd.s32 127, %v923_v52 }
 0x172   :  { %v840_v25 = vxor.u32 2147483648, %v1954_v35 }
 0x173   :  { %v844_v39 = vsel %vm842_vm3, %v843_v11, %v1954_v35  ;;  %v1675_v37 = vsel %vm1673_vm4, %v843_v11, %v1954_v35  ;;  %v922_v40 = vor.u32 %v921_v36, %v920_v43  ;;  %v925_v27 = vshll.u32 %v924_v62, 23 }
 0x174   :  { %v841_v3 = vsel %vm839_vm2, %v1952_v34, %v840_v25  ;;  %v1672_v30 = vsel %vm1670_vm5, %v1952_v34, %v840_v25 }
 0x175   :  { %v845_v10 = vsel %vm838_vm15, %v841_v3, %v844_v39  ;;  %v1676_v59 = vsel %vm1669_vm0, %v1672_v30, %v1675_v37  ;;  %v926_v17 = vor.u32 4788187, %v925_v27  ;;  %v929_v48 = vcvt.s32.f32 %v922_v40 }
 0x176   :  { %v846_v61 = vsel %vm836_vm6, nan, %v845_v10  ;;  %v1677_v33 = vsel %vm836_vm6, nan, %v1676_v59  ;;  %vm939_vm15 = vweird.f32 %v2652_v32 }
 0x177   :  { %1788 = vst [vmem:[#allocation2 + $0x60] sm:$0xff] %v846_v61  ;;  %1796 = vst [vmem:[#allocation2 + $0x68] sm:$0xff] %v1677_v33  ;;  %v927_v9 = vand.u32 2147483647, %v926_v17 }
 0x179   :  { %v930_v5 = vmul.f32 %v929_v48, %v927_v9 }
 0x17b   :  { %v931_v44 = vxor.u32 2147483648, %v930_v5 }
 0x17d   :  { %v932_v15 = vsel %vm849_vm7, %v931_v44, %v930_v5 }
 0x17e   :  { %v935_v23 = vsel %vm848_vm8, %v2652_v32, %v932_v15 }
 0x17f   :  { %1955 = vcosq.f32 %v935_v23 }
 0x180   :  { %1957 = vsinq.f32 %v935_v23 }
 0x189   :  { %v1956_v28 = vpop.eup %1955 }
 0x18a   :  { %v1958_v13 = vpop.eup %1957  ;;  %v946_v45 = vxor.u32 2147483648, %v1956_v28 }
 0x18b   :  { %v943_v53 = vxor.u32 2147483648, %v1958_v13 }
 0x18c   :  { %v947_v47 = vsel %vm945_vm9, %v946_v45, %v1958_v13  ;;  %v1779_v14 = vsel %vm1777_vm10, %v946_v45, %v1958_v13 }
 0x18d   :  { %v944_v29 = vsel %vm942_vm11, %v1956_v28, %v943_v53  ;;  %v1776_v1 = vsel %vm1774_vm12, %v1956_v28, %v943_v53 }
 0x18e   :  { %v948_v19 = vsel %vm941_vm13, %v944_v29, %v947_v47  ;;  %v1780_v56 = vsel %vm1773_vm14, %v1776_v1, %v1779_v14 }
 0x18f   :  { %v949_v42 = vsel %vm939_vm15, nan, %v948_v19  ;;  %v1781_v60 = vsel %vm939_vm15, nan, %v1780_v56 }
 0x190   :  { %1789 = vst [vmem:[#allocation2 + $0x70] sm:$0xff] %v949_v42  ;;  %1797 = vst [vmem:[#allocation2 + $0x78] sm:$0xff] %v1781_v60 }
 0x191   :  { %1971 = shalt.err (!%p1968_p4)
}
 0x192   :  { %s1972_s6 = scalar_lea.hbm %s2819_s2, 2048 }
 0x193   :  { %p1973_p5 = scmp.ne.s32.totalorder %s2819_s2, %s1972_s6  ;;  %p1976_p6 = scmp.lt.u32.totalorder %s1972_s6, %s2819_s2 }
 0x195   :  { %p1978_p7 = pnand %p1976_p6, %p1973_p5 }
 0x197   :  { %1981 = shalt.err (!%p1978_p7)
}
 0x198   :  { %s1993_s11 = smov 256   ;;  %s1994_s12 = smov 16  }
 0x199   :  { %1809 = dma.vmem_to_hbm [thread:$0]  %s1804_s30, 2048, %s2819_s2, [#allocation3], %s1993_s11, %s1993_s11, %s1994_s12  }
 0x19a   :  { %1982 = dma.done.wait [#allocation3], 2048  }
 0x19b   :  { %1983 = vsyncadd [#allocation3], 4294965248 }
 0x19c   :  { %1813 = vsyncpa [#allocation3], 1 }

</bundles_post_ra>
